<compile_context>
chip_gen: v7x
topology: tpu7x:2x2x1
jax: 0.10.0
libtpu: 0.0.40
codegen_flags: <defaults>
</compile_context>

<pallas_src>
from functools import partial

import jax
import jax.numpy as jnp
from jax.experimental import pallas as pl
from jax.experimental.pallas import tpu as pltpu


def _round_up(x, m):
    return ((x + m - 1) // m) * m


def _mlp_kernel(x_ref, w1_ref, b1_ref, w3_ref, b3_ref, w4_ref, b4_ref,
                w2_ref, b2_ref, o_ref):
    # x arrives as f32; cast to bf16 on the VPU (free while DMA-bound).
    # All MXU matmuls use bf16 operands with f32 accumulation; bias/ReLU in f32.
    x = x_ref[...].astype(jnp.bfloat16)

    h = jnp.dot(x, w1_ref[...], preferred_element_type=jnp.float32) + b1_ref[...]
    h = jnp.maximum(h, 0.0)

    h = jnp.dot(h.astype(jnp.bfloat16), w3_ref[...],
                preferred_element_type=jnp.float32) + b3_ref[...]
    h = jnp.maximum(h, 0.0)

    h = jnp.dot(h.astype(jnp.bfloat16), w4_ref[...],
                preferred_element_type=jnp.float32) + b4_ref[...]
    h = jnp.maximum(h, 0.0)

    logits = jnp.dot(h.astype(jnp.bfloat16), w2_ref[...],
                     preferred_element_type=jnp.float32) + b2_ref[...]

    # Numerically-safe sigmoid: clamp so exp(-logits) stays finite in f32,
    # then 1/(1+exp(-x)) with exp + approx reciprocal both on the EUP.
    logits = jnp.clip(logits, -60.0, 60.0)
    o_ref[...] = pl.reciprocal(1.0 + jnp.exp(-logits),
                               approx=True).astype(o_ref.dtype)


def prepare_params(params):
    """One-time weight preparation (call once, outside the per-forward path).

    Casts matmul operands to bf16 and zero-pads the hidden and output dims to
    multiples of 128 so all intermediate activations and the output slab are
    lane-dense. Zero padding is exact: padded hidden units are relu(0+0)=0 and
    contribute nothing downstream; padded output columns are sliced off.
    """
    in_size = params["w1"].shape[0]
    hidden = params["w1"].shape[1]
    out_size = params["w2"].shape[1]
    hp = _round_up(hidden, 128)
    op = _round_up(out_size, 128)

    def pad2(a, rows, cols, dtype):
        out = jnp.zeros((rows, cols), jnp.float32)
        out = out.at[:a.shape[0], :a.shape[1]].set(a)
        return out.astype(dtype)

    return {
        "w1": pad2(params["w1"], in_size, hp, jnp.bfloat16),
        "b1": pad2(params["b1"], 1, hp, jnp.float32),
        "w3": pad2(params["w3"], hp, hp, jnp.bfloat16),
        "b3": pad2(params["b3"], 1, hp, jnp.float32),
        "w4": pad2(params["w4"], hp, hp, jnp.bfloat16),
        "b4": pad2(params["b4"], 1, hp, jnp.float32),
        "w2": pad2(params["w2"], hp, op, jnp.bfloat16),
        "b2": pad2(params["b2"], 1, op, jnp.float32),
    }


def _choose_tile_b(B):
    """Sublane-aligned batch tile; big tiles for throughput, >=2 grid steps
    where possible so the 'parallel' axis shards across v7x's 2 TensorCores."""
    if B <= 8:
        return 8
    if B >= 2048:
        return 1024
    half = (B + 1) // 2
    return min(1024, _round_up(half, 8))


@partial(jax.jit, static_argnames=("out_size",))
def mnist_net_forward(xb, prep, *, out_size):
    """xb: (B, C, H, W) float32 (NCHW, like PyTorch). Returns (B, out_size) f32."""
    B = xb.shape[0]
    x2d = xb.reshape(B, -1)                      # xb.view(B, -1); stays f32
    in_size = x2d.shape[1]
    hp = prep["w1"].shape[1]                     # padded hidden (x128)
    op = prep["w2"].shape[1]                     # padded out    (x128)

    tile_b = _choose_tile_b(B)
    b_pad = pl.cdiv(B, tile_b) * tile_b
    if b_pad != B:
        x2d = jnp.pad(x2d, ((0, b_pad - B), (0, 0)))
    grid = (b_pad // tile_b,)

    weight_bytes = (in_size * hp + 2 * hp * hp + hp * op) * 2   # bf16 resident
    bias_bytes = (3 * hp + op) * 4
    flops = 2 * b_pad * (in_size * hp + 2 * hp * hp + hp * op)
    bytes_accessed = (b_pad * in_size * 4        # x streamed as f32
                      + weight_bytes + bias_bytes
                      + b_pad * op * 2)          # bf16 output slab
    cost = pl.CostEstimate(flops=flops,
                           transcendentals=b_pad * op,
                           bytes_accessed=bytes_accessed)

    # VMEM: double-buffered x (f32) + double-buffered out (bf16) + resident
    # weights/biases, with headroom. Cap at 64 MiB (v7x physical VMEM).
    vmem_needed = (2 * tile_b * in_size * 4
                   + 2 * tile_b * op * 2
                   + weight_bytes + bias_bytes)
    vmem_limit = int(min(max(2 * vmem_needed, 16 << 20), 64 << 20))

    out = pl.pallas_call(
        _mlp_kernel,
        out_shape=jax.ShapeDtypeStruct((b_pad, op), jnp.bfloat16),
        grid=grid,
        in_specs=[
            pl.BlockSpec((tile_b, in_size), lambda i: (i, 0)),   # x (streamed)
            pl.BlockSpec((in_size, hp), lambda i: (0, 0)),       # w1 (resident)
            pl.BlockSpec((1, hp), lambda i: (0, 0)),             # b1
            pl.BlockSpec((hp, hp), lambda i: (0, 0)),            # w3
            pl.BlockSpec((1, hp), lambda i: (0, 0)),             # b3
            pl.BlockSpec((hp, hp), lambda i: (0, 0)),            # w4
            pl.BlockSpec((1, hp), lambda i: (0, 0)),             # b4
            pl.BlockSpec((hp, op), lambda i: (0, 0)),            # w2 (padded)
            pl.BlockSpec((1, op), lambda i: (0, 0)),             # b2 (padded)
        ],
        out_specs=pl.BlockSpec((tile_b, op), lambda i: (i, 0)),
        compiler_params=pltpu.CompilerParams(
            dimension_semantics=("parallel",),
            vmem_limit_bytes=vmem_limit),
        cost_estimate=cost,
    )(x2d, prep["w1"], prep["b1"], prep["w3"], prep["b3"],
      prep["w4"], prep["b4"], prep["w2"], prep["b2"])

    # Slice off padded rows/columns; keep the module's f32 output dtype.
    return out[:B, :out_size].astype(jnp.float32)


def init_params(key, in_size, hidden_size, out_size):
    """Deterministic init mimicking nn.Linear default (U(-1/sqrt(fan_in), +))."""
    def linear(k, fan_in, fan_out):
        kw, kb = jax.random.split(k)
        bound = 1.0 / jnp.sqrt(float(fan_in))
        # Stored as (in, out) so the kernel does x @ W.
        w = jax.random.uniform(kw, (fan_in, fan_out), jnp.float32, -bound, bound)
        b = jax.random.uniform(kb, (1, fan_out), jnp.float32, -bound, bound)
        return w, b

    k1, k3, k4, k2 = jax.random.split(key, 4)
    w1, b1 = linear(k1, in_size, hidden_size)
    w3, b3 = linear(k3, hidden_size, hidden_size)
    w4, b4 = linear(k4, hidden_size, hidden_size)
    w2, b2 = linear(k2, hidden_size, out_size)
    return {"w1": w1, "b1": b1, "w3": w3, "b3": b3,
            "w4": w4, "b4": b4, "w2": w2, "b2": b2}


def reference_forward(xb, params):
    """Pure-JAX f32 reference matching the PyTorch semantics."""
    x = xb.reshape(xb.shape[0], -1)
    h = jnp.maximum(x @ params["w1"] + params["b1"], 0.0)
    h = jnp.maximum(h @ params["w3"] + params["b3"], 0.0)
    h = jnp.maximum(h @ params["w4"] + params["b4"], 0.0)
    return jax.nn.sigmoid(h @ params["w2"] + params["b2"])


if __name__ == "__main__":
    key = jax.random.PRNGKey(0)
    kx, kp = jax.random.split(key)

    # Small MNIST-like setup: batch=2, input images (4, 16, 16) -> in_size=1024.
    B, C, H, W = 2, 4, 16, 16
    in_size = C * H * W
    hidden_size = 32
    out_size = 10

    xb = jax.random.normal(kx, (B, C, H, W), jnp.float32)
    params = init_params(kp, in_size, hidden_size, out_size)

    # One-time weight prep (hoisted out of the per-call forward path).
    prep = jax.tree_util.tree_map(jax.block_until_ready, prepare_params(params))

    out = mnist_net_forward(xb, prep, out_size=out_size)
    out = jax.block_until_ready(out)

    ref = reference_forward(xb, params)
    assert out.shape == (B, out_size)
    # bf16 matmul operands + bf16 output storage + approx reciprocal -> compare
    # against the f32 reference with a bf16-level tolerance.
    assert jnp.allclose(out, ref, atol=3e-2, rtol=0.0), (
        f"max abs err {jnp.max(jnp.abs(out - ref))}")

    print("KERNEL_OK")
</pallas_src>

<mosaic_0001>
module attributes {stable_mosaic.version = 11 : i64} {
  func.func @_mlp_kernel(%arg0: i32, %arg1: memref<8x1024xf32, #tpu.memory_space<vmem>>, %arg2: memref<1024x128xbf16, #tpu.memory_space<vmem>>, %arg3: memref<1x128xf32, #tpu.memory_space<vmem>>, %arg4: memref<128x128xbf16, #tpu.memory_space<vmem>>, %arg5: memref<1x128xf32, #tpu.memory_space<vmem>>, %arg6: memref<128x128xbf16, #tpu.memory_space<vmem>>, %arg7: memref<1x128xf32, #tpu.memory_space<vmem>>, %arg8: memref<128x128xbf16, #tpu.memory_space<vmem>>, %arg9: memref<1x128xf32, #tpu.memory_space<vmem>>, %arg10: memref<8x128xbf16, #tpu.memory_space<vmem>>) attributes {dimension_semantics = [#tpu.dimension_semantics<parallel>], iteration_bounds = array<i64: 1>, scalar_prefetch = 0 : i64, scratch_operands = 0 : i64, tpu.core_type = #tpu.core_type<tc>, window_params = [{transform_indices = @transform_0, window_bounds = array<i64: 8, 1024>}, {pipeline_mode = #tpu.pipeline_mode<synchronous>, transform_indices = @transform_1, window_bounds = array<i64: 1024, 128>}, {pipeline_mode = #tpu.pipeline_mode<synchronous>, transform_indices = @transform_2, window_bounds = array<i64: 1, 128>}, {pipeline_mode = #tpu.pipeline_mode<synchronous>, transform_indices = @transform_3, window_bounds = array<i64: 128, 128>}, {pipeline_mode = #tpu.pipeline_mode<synchronous>, transform_indices = @transform_4, window_bounds = array<i64: 1, 128>}, {pipeline_mode = #tpu.pipeline_mode<synchronous>, transform_indices = @transform_5, window_bounds = array<i64: 128, 128>}, {pipeline_mode = #tpu.pipeline_mode<synchronous>, transform_indices = @transform_6, window_bounds = array<i64: 1, 128>}, {pipeline_mode = #tpu.pipeline_mode<synchronous>, transform_indices = @transform_7, window_bounds = array<i64: 128, 128>}, {pipeline_mode = #tpu.pipeline_mode<synchronous>, transform_indices = @transform_8, window_bounds = array<i64: 1, 128>}, {transform_indices = @transform_9, window_bounds = array<i64: 8, 128>}]} {
    %c0 = arith.constant 0 : index
    %c0_0 = arith.constant 0 : index
    %0 = vector.load %arg1[%c0, %c0_0] : memref<8x1024xf32, #tpu.memory_space<vmem>>, vector<8x1024xf32>
    %1 = arith.truncf %0 : vector<8x1024xf32> to vector<8x1024xbf16>
    %c0_1 = arith.constant 0 : index
    %c0_2 = arith.constant 0 : index
    %2 = vector.load %arg2[%c0_1, %c0_2] : memref<1024x128xbf16, #tpu.memory_space<vmem>>, vector<1024x128xbf16>
    %cst = arith.constant dense<0.000000e+00> : vector<8x128xf32>
    %3 = tpu.matmul %1, %2, %cst {dimension_numbers = #tpu.dot_dimension_numbers<[1], [0], [0], [1], [0, 0, 1, 1], [], []>} : vector<8x1024xbf16>, vector<1024x128xbf16>, vector<8x128xf32> -> vector<8x128xf32>
    %c0_3 = arith.constant 0 : index
    %c0_4 = arith.constant 0 : index
    %4 = vector.load %arg3[%c0_3, %c0_4] : memref<1x128xf32, #tpu.memory_space<vmem>>, vector<1x128xf32>
    %5 = vector.broadcast %4 : vector<1x128xf32> to vector<8x128xf32>
    %6 = arith.addf %3, %5 : vector<8x128xf32>
    %cst_5 = arith.constant 0.000000e+00 : f32
    %7 = vector.broadcast %cst_5 : f32 to vector<8x128xf32>
    %8 = arith.maximumf %6, %7 : vector<8x128xf32>
    %9 = arith.truncf %8 : vector<8x128xf32> to vector<8x128xbf16>
    %c0_6 = arith.constant 0 : index
    %c0_7 = arith.constant 0 : index
    %10 = vector.load %arg4[%c0_6, %c0_7] : memref<128x128xbf16, #tpu.memory_space<vmem>>, vector<128x128xbf16>
    %cst_8 = arith.constant dense<0.000000e+00> : vector<8x128xf32>
    %11 = tpu.matmul %9, %10, %cst_8 {dimension_numbers = #tpu.dot_dimension_numbers<[1], [0], [0], [1], [0, 0, 1, 1], [], []>} : vector<8x128xbf16>, vector<128x128xbf16>, vector<8x128xf32> -> vector<8x128xf32>
    %c0_9 = arith.constant 0 : index
    %c0_10 = arith.constant 0 : index
    %12 = vector.load %arg5[%c0_9, %c0_10] : memref<1x128xf32, #tpu.memory_space<vmem>>, vector<1x128xf32>
    %13 = vector.broadcast %12 : vector<1x128xf32> to vector<8x128xf32>
    %14 = arith.addf %11, %13 : vector<8x128xf32>
    %cst_11 = arith.constant 0.000000e+00 : f32
    %15 = vector.broadcast %cst_11 : f32 to vector<8x128xf32>
    %16 = arith.maximumf %14, %15 : vector<8x128xf32>
    %17 = arith.truncf %16 : vector<8x128xf32> to vector<8x128xbf16>
    %c0_12 = arith.constant 0 : index
    %c0_13 = arith.constant 0 : index
    %18 = vector.load %arg6[%c0_12, %c0_13] : memref<128x128xbf16, #tpu.memory_space<vmem>>, vector<128x128xbf16>
    %cst_14 = arith.constant dense<0.000000e+00> : vector<8x128xf32>
    %19 = tpu.matmul %17, %18, %cst_14 {dimension_numbers = #tpu.dot_dimension_numbers<[1], [0], [0], [1], [0, 0, 1, 1], [], []>} : vector<8x128xbf16>, vector<128x128xbf16>, vector<8x128xf32> -> vector<8x128xf32>
    %c0_15 = arith.constant 0 : index
    %c0_16 = arith.constant 0 : index
    %20 = vector.load %arg7[%c0_15, %c0_16] : memref<1x128xf32, #tpu.memory_space<vmem>>, vector<1x128xf32>
    %21 = vector.broadcast %20 : vector<1x128xf32> to vector<8x128xf32>
    %22 = arith.addf %19, %21 : vector<8x128xf32>
    %cst_17 = arith.constant 0.000000e+00 : f32
    %23 = vector.broadcast %cst_17 : f32 to vector<8x128xf32>
    %24 = arith.maximumf %22, %23 : vector<8x128xf32>
    %25 = arith.truncf %24 : vector<8x128xf32> to vector<8x128xbf16>
    %c0_18 = arith.constant 0 : index
    %c0_19 = arith.constant 0 : index
    %26 = vector.load %arg8[%c0_18, %c0_19] : memref<128x128xbf16, #tpu.memory_space<vmem>>, vector<128x128xbf16>
    %cst_20 = arith.constant dense<0.000000e+00> : vector<8x128xf32>
    %27 = tpu.matmul %25, %26, %cst_20 {dimension_numbers = #tpu.dot_dimension_numbers<[1], [0], [0], [1], [0, 0, 1, 1], [], []>} : vector<8x128xbf16>, vector<128x128xbf16>, vector<8x128xf32> -> vector<8x128xf32>
    %c0_21 = arith.constant 0 : index
    %c0_22 = arith.constant 0 : index
    %28 = vector.load %arg9[%c0_21, %c0_22] : memref<1x128xf32, #tpu.memory_space<vmem>>, vector<1x128xf32>
    %29 = vector.broadcast %28 : vector<1x128xf32> to vector<8x128xf32>
    %30 = arith.addf %27, %29 : vector<8x128xf32>
    %cst_23 = arith.constant -6.000000e+01 : f32
    %cst_24 = arith.constant 6.000000e+01 : f32
    %31 = vector.broadcast %cst_23 : f32 to vector<8x128xf32>
    %32 = arith.maximumf %31, %30 : vector<8x128xf32>
    %33 = vector.broadcast %cst_24 : f32 to vector<8x128xf32>
    %34 = arith.minimumf %33, %32 : vector<8x128xf32>
    %cst_25 = arith.constant 0.000000e+00 : f32
    %35 = vector.broadcast %cst_25 : f32 to vector<8x128xf32>
    %36 = arith.subf %35, %34 : vector<8x128xf32>
    %37 = math.exp %36 : vector<8x128xf32>
    %cst_26 = arith.constant 1.000000e+00 : f32
    %38 = vector.broadcast %cst_26 : f32 to vector<8x128xf32>
    %39 = arith.addf %38, %37 : vector<8x128xf32>
    %40 = tpu.reciprocal %39 {approx = true} : vector<8x128xf32> -> vector<8x128xf32>
    %41 = arith.truncf %40 : vector<8x128xf32> to vector<8x128xbf16>
    %c0_27 = arith.constant 0 : index
    %c0_28 = arith.constant 0 : index
    %42 = vector.load %arg10[%c0_27, %c0_28] : memref<8x128xbf16, #tpu.memory_space<vmem>>, vector<8x128xbf16>
    tpu.vector_store %arg10[%c0_27, %c0_28], %41 {strides = array<i32>} : memref<8x128xbf16, #tpu.memory_space<vmem>>, vector<8x128xbf16>,
    return
  }
  func.func @transform_0(%arg0: i32) -> (i32, i32) {
    %c0_i32 = arith.constant 0 : i32
    %c0_i32_0 = arith.constant 0 : i32
    return %arg0, %c0_i32 : i32, i32
  }
  func.func @transform_1(%arg0: i32) -> (i32, i32) {
    %c0_i32 = arith.constant 0 : i32
    %c0_i32_0 = arith.constant 0 : i32
    %c0_i32_1 = arith.constant 0 : i32
    return %c0_i32, %c0_i32_0 : i32, i32
  }
  func.func @transform_2(%arg0: i32) -> (i32, i32) {
    %c0_i32 = arith.constant 0 : i32
    %c0_i32_0 = arith.constant 0 : i32
    %c0_i32_1 = arith.constant 0 : i32
    return %c0_i32, %c0_i32_0 : i32, i32
  }
  func.func @transform_3(%arg0: i32) -> (i32, i32) {
    %c0_i32 = arith.constant 0 : i32
    %c0_i32_0 = arith.constant 0 : i32
    %c0_i32_1 = arith.constant 0 : i32
    return %c0_i32, %c0_i32_0 : i32, i32
  }
  func.func @transform_4(%arg0: i32) -> (i32, i32) {
    %c0_i32 = arith.constant 0 : i32
    %c0_i32_0 = arith.constant 0 : i32
    %c0_i32_1 = arith.constant 0 : i32
    return %c0_i32, %c0_i32_0 : i32, i32
  }
  func.func @transform_5(%arg0: i32) -> (i32, i32) {
    %c0_i32 = arith.constant 0 : i32
    %c0_i32_0 = arith.constant 0 : i32
    %c0_i32_1 = arith.constant 0 : i32
    return %c0_i32, %c0_i32_0 : i32, i32
  }
  func.func @transform_6(%arg0: i32) -> (i32, i32) {
    %c0_i32 = arith.constant 0 : i32
    %c0_i32_0 = arith.constant 0 : i32
    %c0_i32_1 = arith.constant 0 : i32
    return %c0_i32, %c0_i32_0 : i32, i32
  }
  func.func @transform_7(%arg0: i32) -> (i32, i32) {
    %c0_i32 = arith.constant 0 : i32
    %c0_i32_0 = arith.constant 0 : i32
    %c0_i32_1 = arith.constant 0 : i32
    return %c0_i32, %c0_i32_0 : i32, i32
  }
  func.func @transform_8(%arg0: i32) -> (i32, i32) {
    %c0_i32 = arith.constant 0 : i32
    %c0_i32_0 = arith.constant 0 : i32
    %c0_i32_1 = arith.constant 0 : i32
    return %c0_i32, %c0_i32_0 : i32, i32
  }
  func.func @transform_9(%arg0: i32) -> (i32, i32) {
    %c0_i32 = arith.constant 0 : i32
    %c0_i32_0 = arith.constant 0 : i32
    return %arg0, %c0_i32 : i32, i32
  }
}

</mosaic_0001>

<bundles_post_ra>
// kernel: mnist_net_forward.1
= control target key start
LH: loop header
LB: loop body
LE: loop exit
PB: predicated region body
PF: predicated region fallthrough
CT: control target
= control target key end

     0   :  { %14 = vsyncpa [#allocation3], 0  ;;  %s1484_s30 = smov [#allocation2]   ;;  %s1692_s0 = inlined_call_operand.vmem [shape: f32[8,1024], index: 0, kind: input, shape index: {}]   ;;  %s1693_s1 = inlined_call_operand.hbm [shape: bf16[1024,128], index: 1, kind: input, shape index: {}]   ;;  %s1694_s2 = inlined_call_operand.vmem [shape: f32[1,128], index: 2, kind: input, shape index: {}]   ;;  %s1695_s3 = inlined_call_operand.vmem [shape: bf16[128,128], index: 3, kind: input, shape index: {}]   ;;  %s1696_s4 = inlined_call_operand.vmem [shape: f32[1,128], index: 4, kind: input, shape index: {}]   ;;  %s1697_s5 = inlined_call_operand.vmem [shape: bf16[128,128], index: 5, kind: input, shape index: {}]   ;;  %s1698_s6 = inlined_call_operand.vmem [shape: f32[1,128], index: 6, kind: input, shape index: {}]   ;;  %s1699_s7 = inlined_call_operand.vmem [shape: bf16[128,128], index: 7, kind: input, shape index: {}]   ;;  %s1700_s8 = inlined_call_operand.vmem [shape: f32[1,128], index: 8, kind: input, shape index: {}]   ;;  %s1701_s9 = inlined_call_operand.vmem [shape: bf16[8,128], index: 9, kind: output, shape index: {}]  }
   0x1   :  { %s22_s10 = sshll.u32 %s1484_s30, 4  ;;  %s1460_s13 = scalar_lea.hbm %s1693_s1, 8192  ;;  %s23_s10 = int_to_ptr.vmem [resolvable:$true] %s22_s10 }
   0x2   :  { %p1461_p0 = scmp.ne.s32.totalorder %s1693_s1, %s1460_s13  ;;  %p1464_p1 = scmp.lt.u32.totalorder %s1460_s13, %s1693_s1 }
   0x4   :  { %p1466_p2 = pnand %p1464_p1, %p1461_p0 }
   0x6   :  { %1469 = shalt.err (!%p1466_p2)
}
   0x7   :  { %s1470_s18 = scalar_lea.vmem %s23_s10, 8192  ;;  %p1475_p4 = scmp.lt.s32.totalorder %s23_s10, %s23_s10 }
   0x8   :  { %p1471_p3 = scmp.ne.s32.totalorder %s23_s10, %s1470_s18  ;;  %p1476_p5 = scmp.lt.s32.totalorder %s1470_s18, %s1470_s18 }
   0xa   :  { %p1477_p6 = por %p1476_p5, %p1475_p4 }
   0xc   :  { %p1478_p7 = pnand %p1477_p6, %p1471_p3 }
   0xe   :  { %1481 = shalt.err (!%p1478_p7)
}
   0xf   :  { %s1485_s19 = smov 64   ;;  %s1486_s20 = smov 4  }
  0x10   :  { %28 = dma.hbm_to_vmem [thread:$0]  %s1693_s1, 8192, %s23_s10, [#allocation3], %s1485_s19, %s1485_s19, %s1486_s20  }
  0x11   :  { %1482 = dma.done.wait [#allocation3], 8192  }
  0x12   :  { %1483 = vsyncadd [#allocation3], 4294959104  ;;  %v1368_v0 = vld [vmem:[#allocation2 + $0x40] sm:$0xff]   ;;  %v1372_v4 = vld [vmem:[#allocation2 + $0x48] sm:$0xff]   ;;  %vm1488_vm0 = vmmov 0  }
  0x13   :  { %v1369_v1 = vld [vmem:[#allocation2 + $0xc0] sm:$0xff]   ;;  %1188 = vmatprep.subr.bf16.mxu0 %v1368_v0  ;;  %v1373_v5 = vld [vmem:[#allocation2 + $0xc8] sm:$0xff]   ;;  %v1376_v8 = vld [vmem:[#allocation2 + $0x50] sm:$0xff]  }
  0x14   :  { %v1370_v2 = vld [vmem:[#allocation2] sm:$0xff]   ;;  %1210 = vmatprep.subr.bf16.mxu1 %v1369_v1  ;;  %v1374_v6 = vld [vmem:[#allocation2 + $0x8] sm:$0xff]   ;;  %v1377_v9 = vld [vmem:[#allocation2 + $0xd0] sm:$0xff]  }
  0x15   :  { %v1371_v3 = vld [vmem:[#allocation2 + $0x80] sm:$0xff]   ;;  %1189 = vmatpush3.bf16.msra.mxu0 %v1370_v2  ;;  %v1375_v7 = vld [vmem:[#allocation2 + $0x88] sm:$0xff]   ;;  %v1378_v10 = vld [vmem:[#allocation2 + $0x10] sm:$0xff]  }
  0x16   :  { %1211 = vmatpush3.bf16.msra.mxu1 %v1371_v3  ;;  %1190 = vmatprep.subr.bf16.mxu0 %v1372_v4  ;;  %v1379_v11 = vld [vmem:[#allocation2 + $0x90] sm:$0xff]   ;;  %v1380_v12 = vld [vmem:[#allocation2 + $0x58] sm:$0xff]   ;;  %v1384_v16 = vld [vmem:[#allocation2 + $0x60] sm:$0xff]  }
  0x17   :  { %1212 = vmatprep.subr.bf16.mxu1 %v1373_v5  ;;  %v1381_v13 = vld [vmem:[#allocation2 + $0xd8] sm:$0xff]   ;;  %v1385_v17 = vld [vmem:[#allocation2 + $0xe0] sm:$0xff]   ;;  %v1388_v20 = vld [vmem:[#allocation2 + $0x68] sm:$0xff]  }
  0x18   :  { %v1382_v14 = vld [vmem:[#allocation2 + $0x18] sm:$0xff]   ;;  %v1386_v18 = vld [vmem:[#allocation2 + $0x20] sm:$0xff]   ;;  %v1389_v21 = vld [vmem:[#allocation2 + $0xe8] sm:$0xff]  }
  0x19   :  { %1191 = vmatpush3.bf16.msra.mxu0 %v1374_v6  ;;  %v1383_v15 = vld [vmem:[#allocation2 + $0x98] sm:$0xff]   ;;  %v1387_v19 = vld [vmem:[#allocation2 + $0xa0] sm:$0xff]   ;;  %v1390_v22 = vld [vmem:[#allocation2 + $0x28] sm:$0xff]  }
  0x1a   :  { %1213 = vmatpush3.bf16.msra.mxu1 %v1375_v7  ;;  %1192 = vmatprep.subr.bf16.mxu0 %v1376_v8  ;;  %v1391_v23 = vld [vmem:[#allocation2 + $0xa8] sm:$0xff]   ;;  %v1392_v24 = vld [vmem:[#allocation2 + $0x70] sm:$0xff]   ;;  %v1396_v28 = vld [vmem:[#allocation2 + $0x78] sm:$0xff]  }
  0x1b   :  { %1214 = vmatprep.subr.bf16.mxu1 %v1377_v9  ;;  %v1393_v25 = vld [vmem:[#allocation2 + $0xf0] sm:$0xff]   ;;  %v1397_v29 = vld [vmem:[#allocation2 + $0xf8] sm:$0xff]   ;;  %v48_v32 = vld [vmem:[%s1692_s0 + $0x8] sm:$0xff] }
  0x1c   :  { %v1394_v26 = vld [vmem:[#allocation2 + $0x30] sm:$0xff]   ;;  %v1398_v30 = vld [vmem:[#allocation2 + $0x38] sm:$0xff]   ;;  %v47_v34 = vld [vmem:[%s1692_s0] sm:$0xff]  ;;  %v56_v35 = vpack.c.bf16 %v48_v32, %v48_v32 }
  0x1d   :  { %1193 = vmatpush3.bf16.msra.mxu0 %v1378_v10  ;;  %v1395_v27 = vld [vmem:[#allocation2 + $0xb0] sm:$0xff]   ;;  %v1399_v31 = vld [vmem:[#allocation2 + $0xb8] sm:$0xff]   ;;  %v55_v37 = vpack.c.bf16 %v47_v34, %v47_v34  ;;  %v1400_v40 = vld [vmem:[#allocation2 + $0x140] sm:$0xff]  }
  0x1e   :  { %1215 = vmatpush3.bf16.msra.mxu1 %v1379_v11  ;;  %1194 = vmatprep.subr.bf16.mxu0 %v1380_v12  ;;  %v50_v33 = vld [vmem:[%s1692_s0 + $0x18] sm:$0xff]  ;;  %v49_v38 = vld [vmem:[%s1692_s0 + $0x10] sm:$0xff]  ;;  %v1401_v41 = vld [vmem:[#allocation2 + $0x1c0] sm:$0xff]  }
  0x1f   :  { %1216 = vmatprep.subr.bf16.mxu1 %v1381_v13  ;;  %v58_v36 = vpack.c.bf16 %v50_v33, %v50_v33  ;;  %v57_v39 = vpack.c.bf16 %v49_v38, %v49_v38  ;;  %614 = vmatprep.mubr.bf16.mxu0 %v56_v35  ;;  %v1402_v42 = vld [vmem:[#allocation2 + $0x100] sm:$0xff]   ;;  %v1404_v44 = vld [vmem:[#allocation2 + $0x148] sm:$0xff]   ;;  %v1408_v48 = vld [vmem:[#allocation2 + $0x150] sm:$0xff]  }
  0x20   :  { %v1403_v43 = vld [vmem:[#allocation2 + $0x180] sm:$0xff]   ;;  %v1405_v45 = vld [vmem:[#allocation2 + $0x1c8] sm:$0xff]   ;;  %v1409_v49 = vld [vmem:[#allocation2 + $0x1d0] sm:$0xff]  }
  0x21   :  { %1195 = vmatpush3.bf16.msra.mxu0 %v1382_v14  ;;  %654 = vmatprep.mubr.bf16.mxu1 %v58_v36  ;;  %v1406_v46 = vld [vmem:[#allocation2 + $0x108] sm:$0xff]   ;;  %v1410_v50 = vld [vmem:[#allocation2 + $0x110] sm:$0xff]   ;;  %v1412_v52 = vld [vmem:[#allocation2 + $0x158] sm:$0xff]  }
  0x22   :  { %1217 = vmatpush3.bf16.msra.mxu1 %v1383_v15  ;;  %1196 = vmatprep.subr.bf16.mxu0 %v1384_v16  ;;  %v1407_v47 = vld [vmem:[#allocation2 + $0x188] sm:$0xff]   ;;  %v1411_v51 = vld [vmem:[#allocation2 + $0x190] sm:$0xff]   ;;  %v1413_v53 = vld [vmem:[#allocation2 + $0x1d8] sm:$0xff]  }
  0x23   :  { %1218 = vmatprep.subr.bf16.mxu1 %v1385_v17  ;;  %v1414_v54 = vld [vmem:[#allocation2 + $0x118] sm:$0xff]   ;;  %v1416_v56 = vld [vmem:[#allocation2 + $0x160] sm:$0xff]   ;;  %v1420_v60 = vld [vmem:[#allocation2 + $0x168] sm:$0xff]   ;;  %v1487_v17 = vmov 0.0  }
  0x24   :  { %v1415_v55 = vld [vmem:[#allocation2 + $0x198] sm:$0xff]   ;;  %v1417_v57 = vld [vmem:[#allocation2 + $0x1e0] sm:$0xff]   ;;  %v1421_v61 = vld [vmem:[#allocation2 + $0x1e8] sm:$0xff]  }
  0x25   :  { %1197 = vmatpush3.bf16.msra.mxu0 %v1386_v18  ;;  %v1418_v58 = vld [vmem:[#allocation2 + $0x120] sm:$0xff]   ;;  %v1422_v62 = vld [vmem:[#allocation2 + $0x128] sm:$0xff]   ;;  %v1424_v0 = vld [vmem:[#allocation2 + $0x170] sm:$0xff]  }
  0x26   :  { %1219 = vmatpush3.bf16.msra.mxu1 %v1387_v19  ;;  %1198 = vmatprep.subr.bf16.mxu0 %v1388_v20  ;;  %v1419_v59 = vld [vmem:[#allocation2 + $0x1a0] sm:$0xff]   ;;  %v1423_v63 = vld [vmem:[#allocation2 + $0x1a8] sm:$0xff]   ;;  %v1425_v1 = vld [vmem:[#allocation2 + $0x1f0] sm:$0xff]  }
  0x27   :  { %1220 = vmatprep.subr.bf16.mxu1 %v1389_v21  ;;  %v1426_v2 = vld [vmem:[#allocation2 + $0x130] sm:$0xff]   ;;  %v1428_v4 = vld [vmem:[#allocation2 + $0x178] sm:$0xff]   ;;  %v52_v8 = vld [vmem:[%s1692_s0 + $0x28] sm:$0xff] }
  0x28   :  { %v1427_v3 = vld [vmem:[#allocation2 + $0x1b0] sm:$0xff]   ;;  %v1429_v5 = vld [vmem:[#allocation2 + $0x1f8] sm:$0xff]   ;;  %v60_v10 = vpack.c.bf16 %v52_v8, %v52_v8  ;;  %v51_v12 = vld [vmem:[%s1692_s0 + $0x20] sm:$0xff] }
  0x29   :  { %1199 = vmatpush3.bf16.msra.mxu0 %v1390_v22  ;;  %v1430_v6 = vld [vmem:[#allocation2 + $0x138] sm:$0xff]   ;;  %v53_v13 = vld [vmem:[%s1692_s0 + $0x30] sm:$0xff]  ;;  %v59_v14 = vpack.c.bf16 %v51_v12, %v51_v12  ;;  %v1432_v16 = vld [vmem:[%s1695_s3] sm:$0xff]  }
  0x2a   :  { %1221 = vmatpush3.bf16.msra.mxu1 %v1391_v23  ;;  %1200 = vmatprep.subr.bf16.mxu0 %v1392_v24  ;;  %v1431_v7 = vld [vmem:[#allocation2 + $0x1b8] sm:$0xff]   ;;  %v61_v15 = vpack.c.bf16 %v53_v13, %v53_v13  ;;  %v1433_v18 = vld [vmem:[%s1695_s3 + $0x8] sm:$0xff]   ;;  %v1434_v19 = vld [vmem:[%s1695_s3 + $0x10] sm:$0xff]  }
  0x2b   :  { %1222 = vmatprep.subr.bf16.mxu1 %v1393_v25  ;;  %v54_v9 = vld [vmem:[%s1692_s0 + $0x38] sm:$0xff]  ;;  %v1436_v21 = vld [vmem:[%s1695_s3 + $0x20] sm:$0xff]   ;;  %v1437_v22 = vld [vmem:[%s1695_s3 + $0x28] sm:$0xff]  }
  0x2c   :  { %v62_v11 = vpack.c.bf16 %v54_v9, %v54_v9  ;;  %v1435_v20 = vld [vmem:[%s1695_s3 + $0x18] sm:$0xff]   ;;  %v1438_v23 = vld [vmem:[%s1695_s3 + $0x30] sm:$0xff]   ;;  %v1440_v25 = vld [vmem:[%s1697_s5] sm:$0xff]  }
  0x2d   :  { %1201 = vmatpush3.bf16.msra.mxu0 %v1394_v26  ;;  %v1439_v24 = vld [vmem:[%s1695_s3 + $0x38] sm:$0xff]   ;;  %v1441_v26 = vld [vmem:[%s1697_s5 + $0x8] sm:$0xff]   ;;  %v1095_v33 = vld [vmem:[%s1694_s2] ss:$0 sm:$0xff] }
  0x2e   :  { %1223 = vmatpush3.bf16.msra.mxu1 %v1395_v27  ;;  %1202 = vmatprep.subr.bf16.mxu0 %v1396_v28  ;;  %v1442_v27 = vld [vmem:[%s1697_s5 + $0x10] sm:$0xff]   ;;  %v1443_v28 = vld [vmem:[%s1697_s5 + $0x18] sm:$0xff]   ;;  %v1169_v12 = vld [vmem:[%s1698_s6] ss:$0 sm:$0xff] }
  0x2f   :  { %1224 = vmatprep.subr.bf16.mxu1 %v1397_v29  ;;  %v1444_v29 = vld [vmem:[%s1697_s5 + $0x20] sm:$0xff]  }
  0x31   :  { %1203 = vmatpush3.bf16.msra.mxu0 %v1398_v30  ;;  %v1445_v30 = vld [vmem:[%s1697_s5 + $0x28] sm:$0xff]  }
  0x32   :  { %1225 = vmatpush3.bf16.msra.mxu1 %v1399_v31  ;;  %1232 = vmatprep.subr.bf16.mxu0 %v1400_v40 }
  0x33   :  { %1254 = vmatprep.subr.bf16.mxu1 %v1401_v41 }
  0x34   :  { %615 = vmatmul.mubr.bf16.vlgmr.msra.gmra.mrb[0].mxu0 %v55_v37 }
  0x35   :  { %655 = vmatmul.mubr.bf16.vlgmr.msra.gmra.mrb[0].mxu1 %v57_v39  ;;  %1233 = vmatpush3.bf16.msra.mxu0 %v1402_v42 }
  0x36   :  { %1255 = vmatpush3.bf16.msra.mxu1 %v1403_v43  ;;  %1234 = vmatprep.subr.bf16.mxu0 %v1404_v44 }
  0x37   :  { %1256 = vmatprep.subr.bf16.mxu1 %v1405_v45  ;;  %694 = vmatprep.mubr.bf16.mxu0 %v60_v10  ;;  %v1454_v10 = vld [vmem:[%s1699_s7 + $0x30] sm:$0xff]  }
  0x38   :  { %734 = vmatprep.mubr.bf16.mxu1 %v62_v11  ;;  %v1455_v11 = vld [vmem:[%s1699_s7 + $0x38] sm:$0xff]  }
  0x39   :  { %1235 = vmatpush3.bf16.msra.mxu0 %v1406_v46 }
  0x3a   :  { %1257 = vmatpush3.bf16.msra.mxu1 %v1407_v47  ;;  %1236 = vmatprep.subr.bf16.mxu0 %v1408_v48 }
  0x3b   :  { %1258 = vmatprep.subr.bf16.mxu1 %v1409_v49 }
  0x3d   :  { %1237 = vmatpush3.bf16.msra.mxu0 %v1410_v50 }
  0x3e   :  { %1259 = vmatpush3.bf16.msra.mxu1 %v1411_v51  ;;  %1238 = vmatprep.subr.bf16.mxu0 %v1412_v52 }
  0x3f   :  { %1260 = vmatprep.subr.bf16.mxu1 %v1413_v53 }
  0x41   :  { %1239 = vmatpush3.bf16.msra.mxu0 %v1414_v54 }
  0x42   :  { %1261 = vmatpush3.bf16.msra.mxu1 %v1415_v55  ;;  %1240 = vmatprep.subr.bf16.mxu0 %v1416_v56 }
  0x43   :  { %1262 = vmatprep.subr.bf16.mxu1 %v1417_v57 }
  0x45   :  { %1241 = vmatpush3.bf16.msra.mxu0 %v1418_v58  ;;  %v1446_v58 = vld [vmem:[%s1697_s5 + $0x30] sm:$0xff]  }
  0x46   :  { %1263 = vmatpush3.bf16.msra.mxu1 %v1419_v59  ;;  %1242 = vmatprep.subr.bf16.mxu0 %v1420_v60  ;;  %v1447_v59 = vld [vmem:[%s1697_s5 + $0x38] sm:$0xff]   ;;  %v1448_v60 = vld [vmem:[%s1699_s7] sm:$0xff]  }
  0x47   :  { %1264 = vmatprep.subr.bf16.mxu1 %v1421_v61  ;;  %v1449_v61 = vld [vmem:[%s1699_s7 + $0x8] sm:$0xff]  }
  0x49   :  { %1243 = vmatpush3.bf16.msra.mxu0 %v1422_v62  ;;  %v1450_v62 = vld [vmem:[%s1699_s7 + $0x10] sm:$0xff]  }
  0x4a   :  { %1265 = vmatpush3.bf16.msra.mxu1 %v1423_v63  ;;  %1244 = vmatprep.subr.bf16.mxu0 %v1424_v0  ;;  %v1451_v63 = vld [vmem:[%s1699_s7 + $0x18] sm:$0xff]   ;;  %v1452_v0 = vld [vmem:[%s1699_s7 + $0x20] sm:$0xff]  }
  0x4b   :  { %1266 = vmatprep.subr.bf16.mxu1 %v1425_v1  ;;  %v1453_v1 = vld [vmem:[%s1699_s7 + $0x28] sm:$0xff]  }
  0x4d   :  { %1245 = vmatpush3.bf16.msra.mxu0 %v1426_v2  ;;  %v1160_v2 = vld [vmem:[%s1696_s4] ss:$0 sm:$0xff] }
  0x4e   :  { %1267 = vmatpush3.bf16.msra.mxu1 %v1427_v3  ;;  %1246 = vmatprep.subr.bf16.mxu0 %v1428_v4 }
  0x4f   :  { %1268 = vmatprep.subr.bf16.mxu1 %v1429_v5 }
  0x51   :  { %1247 = vmatpush3.bf16.msra.mxu0 %v1430_v6 }
  0x52   :  { %1269 = vmatpush3.bf16.msra.mxu1 %v1431_v7  ;;  %1303 = vmatprep.subr.bf16.mxu0 %v1487_v17 }
  0x53   :  { %1323 = vmatprep.subr.bf16.mxu1 %v1487_v17 }
  0x54   :  { %695 = vmatmul.mubr.bf16.vlgmr.msra.gmra.mrb[4].mxu0 %v59_v14 }
  0x55   :  { %735 = vmatmul.mubr.bf16.vlgmr.msra.gmra.mrb[4].mxu1 %v61_v15  ;;  %1304 = vmatpush3.bf16.msra.mxu0 %v1432_v16 }
  0x56   :  { %1305 = vmatprep.subr.bf16.mxu0 %v1487_v17  ;;  %1319 = vmatprep.mubr.msk.bf16.mxu0 %vm1488_vm0, %v1487_v17 }
  0x57   :  { %1339 = vmatprep.mubr.msk.bf16.mxu1 %vm1488_vm0, %v1487_v17  ;;  %1324 = vmatpush3.bf16.msra.mxu1 %v1440_v25 }
  0x58   :  { %1325 = vmatprep.subr.bf16.mxu1 %v1487_v17 }
  0x59   :  { %1306 = vmatpush3.bf16.msra.mxu0 %v1433_v18 }
  0x5a   :  { %1307 = vmatprep.subr.bf16.mxu0 %v1487_v17 }
  0x5b   :  { %1326 = vmatpush3.bf16.msra.mxu1 %v1441_v26 }
  0x5c   :  { %1327 = vmatprep.subr.bf16.mxu1 %v1487_v17 }
  0x5d   :  { %1308 = vmatpush3.bf16.msra.mxu0 %v1434_v19 }
  0x5e   :  { %1309 = vmatprep.subr.bf16.mxu0 %v1487_v17 }
  0x5f   :  { %1328 = vmatpush3.bf16.msra.mxu1 %v1442_v27 }
  0x60   :  { %1329 = vmatprep.subr.bf16.mxu1 %v1487_v17 }
  0x61   :  { %1310 = vmatpush3.bf16.msra.mxu0 %v1435_v20 }
  0x62   :  { %1311 = vmatprep.subr.bf16.mxu0 %v1487_v17 }
  0x63   :  { %1330 = vmatpush3.bf16.msra.mxu1 %v1443_v28 }
  0x64   :  { %1331 = vmatprep.subr.bf16.mxu1 %v1487_v17 }
  0x65   :  { %1312 = vmatpush3.bf16.msra.mxu0 %v1436_v21 }
  0x66   :  { %1313 = vmatprep.subr.bf16.mxu0 %v1487_v17 }
  0x67   :  { %1332 = vmatpush3.bf16.msra.mxu1 %v1444_v29 }
  0x68   :  { %1333 = vmatprep.subr.bf16.mxu1 %v1487_v17 }
  0x69   :  { %1314 = vmatpush3.bf16.msra.mxu0 %v1437_v22 }
  0x6a   :  { %1315 = vmatprep.subr.bf16.mxu0 %v1487_v17 }
  0x6b   :  { %1334 = vmatpush3.bf16.msra.mxu1 %v1445_v30 }
  0x6c   :  { %1335 = vmatprep.subr.bf16.mxu1 %v1487_v17 }
  0x6d   :  { %1316 = vmatpush3.bf16.msra.mxu0 %v1438_v23 }
  0x6e   :  { %1317 = vmatprep.subr.bf16.mxu0 %v1487_v17 }
  0x6f   :  { %1336 = vmatpush3.bf16.msra.mxu1 %v1446_v58 }
  0x70   :  { %1337 = vmatprep.subr.bf16.mxu1 %v1487_v17 }
  0x71   :  { %1318 = vmatpush3.bf16.msra.mxu0 %v1439_v24 }
  0x72   :  { %1343 = vmatprep.subr.bf16.mxu0 %v1487_v17 }
  0x73   :  { %1338 = vmatpush3.bf16.msra.mxu1 %v1447_v59 }
 0x107   :  { %v1204_v31 = vpop.f32.mrb[0].mxu0 }
 0x108   :  { %v1226_v32 = vpop.f32.mrb[0].mxu1  ;;  %v1205_v34 = vpop.f32.mrb[1].mxu0 }
 0x109   :  { %v1227_v35 = vpop.f32.mrb[1].mxu1  ;;  %v1206_v36 = vadd.f32 %v1205_v34, %v1204_v31  ;;  %v1207_v38 = vpop.f32.mrb[2].mxu0 }
 0x10a   :  { %v1228_v37 = vadd.f32 %v1227_v35, %v1226_v32  ;;  %v1229_v39 = vpop.f32.mrb[2].mxu1  ;;  %v1208_v40 = vpop.f32.mrb[3].mxu0 }
 0x10b   :  { %v1230_v41 = vpop.f32.mrb[3].mxu1  ;;  %v617_v42 = vadd.f32 %v1206_v36, %v1095_v33 }
 0x10d   :  { %v657_v43 = vadd.f32 %v1228_v37, %v617_v42 }
 0x127   :  { %v1248_v44 = vpop.f32.mrb[4].mxu0 }
 0x128   :  { %v1270_v45 = vpop.f32.mrb[4].mxu1  ;;  %v1249_v46 = vpop.f32.mrb[5].mxu0 }
 0x129   :  { %v1250_v47 = vadd.f32 %v1249_v46, %v1248_v44  ;;  %v1271_v48 = vpop.f32.mrb[5].mxu1  ;;  %v1251_v49 = vpop.f32.mrb[6].mxu0 }
 0x12a   :  { %v1272_v50 = vadd.f32 %v1271_v48, %v1270_v45  ;;  %v1273_v51 = vpop.f32.mrb[6].mxu1  ;;  %v1252_v52 = vpop.f32.mrb[7].mxu0 }
 0x12b   :  { %v697_v53 = vadd.f32 %v1250_v47, %v657_v43  ;;  %v1274_v54 = vpop.f32.mrb[7].mxu1 }
 0x12d   :  { %v737_v55 = vadd.f32 %v1272_v50, %v697_v53 }
 0x12f   :  { %v742_v56 = vmax.f32 %v737_v55, 0.0 }
 0x131   :  { %v743_v57 = vpack.c.bf16 %v742_v56, %v742_v56 }
 0x133   :  { %1320 = vmatmul.mubr.bf16.vlgmr.msra.gmra.mrb[8].mxu0 %v743_v57 }
 0x134   :  { %1359 = vmatprep.mubr.msk.bf16.mxu0 %vm1488_vm0, %v1487_v17  ;;  %1344 = vmatpush3.bf16.msra.mxu0 %v1448_v60 }
 0x135   :  { %1345 = vmatprep.subr.bf16.mxu0 %v1487_v17 }
 0x138   :  { %1346 = vmatpush3.bf16.msra.mxu0 %v1449_v61 }
 0x139   :  { %1347 = vmatprep.subr.bf16.mxu0 %v1487_v17 }
 0x13c   :  { %1348 = vmatpush3.bf16.msra.mxu0 %v1450_v62 }
 0x13d   :  { %1349 = vmatprep.subr.bf16.mxu0 %v1487_v17 }
 0x140   :  { %1350 = vmatpush3.bf16.msra.mxu0 %v1451_v63 }
 0x141   :  { %1351 = vmatprep.subr.bf16.mxu0 %v1487_v17 }
 0x144   :  { %1352 = vmatpush3.bf16.msra.mxu0 %v1452_v0 }
 0x145   :  { %1353 = vmatprep.subr.bf16.mxu0 %v1487_v17 }
 0x148   :  { %1354 = vmatpush3.bf16.msra.mxu0 %v1453_v1 }
 0x149   :  { %1355 = vmatprep.subr.bf16.mxu0 %v1487_v17 }
 0x14c   :  { %1356 = vmatpush3.bf16.msra.mxu0 %v1454_v10 }
 0x14d   :  { %1357 = vmatprep.subr.bf16.mxu0 %v1487_v17  ;;  %v1178_v17 = vld [vmem:[%s1700_s8] ss:$0 sm:$0xff] }
 0x150   :  { %1358 = vmatpush3.bf16.msra.mxu0 %v1455_v11 }
 0x206   :  { %v849_v3 = vpop.f32.mrb[8].mxu0 }
 0x207   :  { %v850_v4 = vadd.f32 %v1160_v2, %v849_v3  ;;  %v1321_v5 = vpop.f32.mrb[9].mxu0 }
 0x208   :  { %v852_v6 = vpop.f32.mrb[10].mxu0 }
 0x209   :  { %v855_v7 = vmax.f32 %v850_v4, 0.0  ;;  %v1322_v8 = vpop.f32.mrb[11].mxu0 }
 0x20b   :  { %v856_v9 = vpack.c.bf16 %v855_v7, %v855_v7 }
 0x20d   :  { %1340 = vmatmul.mubr.bf16.vlgmr.msra.gmra.mrb[8].mxu1 %v856_v9 }
 0x2e0   :  { %v962_v13 = vpop.f32.mrb[8].mxu1 }
 0x2e1   :  { %v963_v14 = vadd.f32 %v1169_v12, %v962_v13  ;;  %v1341_v15 = vpop.f32.mrb[9].mxu1 }
 0x2e2   :  { %v965_v16 = vpop.f32.mrb[10].mxu1 }
 0x2e3   :  { %v968_v18 = vmax.f32 %v963_v14, 0.0  ;;  %v1342_v19 = vpop.f32.mrb[11].mxu1 }
 0x2e5   :  { %v969_v20 = vpack.c.bf16 %v968_v18, %v968_v18 }
 0x2e7   :  { %1360 = vmatmul.mubr.bf16.vlgmr.msra.gmra.mrb[12].mxu0 %v969_v20 }
 0x3ba   :  { %v1075_v21 = vpop.f32.mrb[12].mxu0 }
 0x3bb   :  { %v1076_v22 = vadd.f32 %v1178_v17, %v1075_v21  ;;  %v1361_v23 = vpop.f32.mrb[13].mxu0 }
 0x3bc   :  { %v1078_v24 = vpop.f32.mrb[14].mxu0 }
 0x3bd   :  { %v1187_v25 = vclamps-f32 %v1076_v22, 60.0  ;;  %v1362_v26 = vpop.f32.mrb[15].mxu0 }
 0x3bf   :  { %v1083_v27 = vsub.f32 0.0, %v1187_v25 }
 0x3c1   :  { %v1084_v28 = vmul.f32 1.442695, %v1083_v27 }
 0x3c3   :  { %1456 = vpow2.f32 %v1084_v28 }
 0x3cd   :  { %v1457_v29 = vpop.eup %1456 }
 0x3ce   :  { %v1086_v30 = vadd.f32 1.0, %v1457_v29 }
 0x3d0   :  { %1458 = vrcp.f32 %v1086_v30 }
 0x3da   :  { %v1459_v31 = vpop.eup %1458 }
 0x3db   :  { %v1088_v32 = vpack.c.bf16 %v1459_v31, %v1459_v31 }
 0x3dd   :  { %1089 = vst [vmem:[%s1701_s9] sm:$0xf] %v1088_v32 }
 0x3de   :  { %1094 = vsyncpa [#allocation3], 1 }

</bundles_post_ra>
